<compile_context>
chip_gen: v5e
topology: v5e:2x2
jax: 0.10.0
libtpu: 0.0.40
codegen_flags: <defaults>
</compile_context>

<pallas_src>
import jax
import jax.numpy as jnp
from jax.experimental import pallas as pl
from jax.experimental.pallas import tpu as pltpu


def _round_up(x, m):
    return (x + m - 1) // m * m


def _sublane_multiple(*dtypes):
    # Sublane packing of the narrowest dtype involved: 8 rows for 4-byte,
    # 16 for 2-byte, 32 for 1-byte elements.
    min_item = min(jnp.dtype(d).itemsize for d in dtypes)
    return 8 * max(1, 4 // min_item)


def _vmem_capacity_bytes():
    try:
        info = pltpu.get_tpu_info()
        cap = getattr(info, "vmem_capacity_bytes", None)
        if cap:
            return int(cap)
    except Exception:
        pass
    return 64 * 1024 * 1024  # conservative fallback (v7x per-core VMEM)


def _down1d_kernel(w_ref, bias_ref, x_ref, o_ref, carry_ref):
    # w_ref: (3, Cp, Cp)   bias_ref: (Cp, 1)   x_ref: (2, Cp, tL)
    # o_ref: (Cp, tL)      carry_ref (VMEM scratch): (Cp, 1)
    @pl.when(pl.program_id(1) == 0)
    def _():
        # First L-tile of this batch row: odd[-1] == 0 (the conv's left padding).
        carry_ref[...] = jnp.zeros_like(carry_ref)

    ev = x_ref[0]  # even phase: x_ext[:, 2j]   -> tap k=1
    od = x_ref[1]  # odd  phase: x_ext[:, 2j+1] -> tap k=2
    # tap k=0: x_ext[:, 2j-1] == odd phase shifted right by one column; column 0
    # comes from the previous L-tile via the carry scratch.
    tap0 = jnp.concatenate([carry_ref[...], od[:, :-1]], axis=1)

    acc = jnp.dot(w_ref[0], tap0, preferred_element_type=jnp.float32)
    acc = acc + jnp.dot(w_ref[1], ev, preferred_element_type=jnp.float32)
    acc = acc + jnp.dot(w_ref[2], od, preferred_element_type=jnp.float32)
    o_ref[...] = (acc + bias_ref[...]).astype(o_ref.dtype)

    # Last odd column of this tile -> tap0[:, 0] of the next tile.
    carry_ref[...] = od[:, -1:]


def downsample1d(x, weight, bias, *, compute_dtype=None, tile_l=None):
    """Conv1d(C, C, kernel=3, stride=2, padding=1) in NCL layout.

    x: (B, C, L); weight: (C, C, 3); bias: (C,).  Returns (B, C, ceil(L/2)).
    compute_dtype: optional dtype for the streamed operands (e.g. jnp.bfloat16
    on v6e/v7x); accumulation stays f32.  tile_l: optional L-tile override.
    """
    B, C, L = x.shape
    K = 3
    L_out = (L + 2 - K) // 2 + 1  # == ceil(L / 2), matches PyTorch
    cdt = x.dtype if compute_dtype is None else jnp.dtype(compute_dtype)
    out_dt = x.dtype

    Cp = _round_up(C, _sublane_multiple(cdt, out_dt))
    in_item = jnp.dtype(cdt).itemsize
    out_item = jnp.dtype(out_dt).itemsize

    # --- generation-gated, byte-accurate VMEM budget --------------------------
    vmem_cap = _vmem_capacity_bytes()
    budget = vmem_cap // 2            # ~32 MiB on v7x, ~64 MiB on v5e/v6e
    vmem_limit = (vmem_cap * 3) // 4  # ~48 MiB on v7x, ~96 MiB on v5e/v6e

    # Resident bytes independent of tL: double-buffered weights + bias + carry.
    w_bytes = 2 * (K * Cp * Cp * in_item)
    bias_bytes = 2 * (Cp * 128 * 4)           # (Cp, 1) block lane-pads to 128
    fixed = w_bytes + bias_bytes + Cp * 128 * in_item + (1 << 20)  # + carry + slack
    # Per unit of tL: double-buffered (2, Cp, tL) input + (Cp, tL) output.
    per_tl = 2 * (2 * Cp) * in_item + 2 * Cp * out_item
    tl_fit = max(128, (max(budget - fixed, 0) // per_tl) // 128 * 128)

    if tile_l is not None:
        tL = max(128, _round_up(tile_l, 128))
    else:
        tL = min(tl_fit, _round_up(L_out, 128), 8192)
    L_pad = _round_up(L_out, tL)
    n_lt = L_pad // tL

    # --- glue: zero-extend + stride-2 phase split (one transpose pass) --------
    # xp[b, p, c, j] = x_ext[b, c, 2*j + p], x_ext = x zero-padded to 2*L_pad.
    x_p = jnp.pad(x, ((0, 0), (0, Cp - C), (0, 2 * L_pad - L))).astype(cdt)
    xp = jnp.moveaxis(x_p.reshape(B, Cp, L_pad, 2), 3, 1)  # (B, 2, Cp, L_pad)
    # TODO(synk): a fully fused in-kernel de-interleave needs lane-stride-2 ref
    # loads, which Mosaic does not support on the minormost dim.

    # Weights: w_stack[k, o, i] = weight[o, i, k]; bias as an f32 (Cp, 1) column.
    w_stack = jnp.zeros((K, Cp, Cp), cdt).at[:, :C, :C].set(
        jnp.transpose(weight, (2, 0, 1)).astype(cdt))
    b_col = jnp.zeros((Cp, 1), jnp.float32).at[:C, 0].set(bias.astype(jnp.float32))

    out_p = pl.pallas_call(
        _down1d_kernel,
        out_shape=jax.ShapeDtypeStruct((B, Cp, L_pad), out_dt),
        grid_spec=pltpu.PrefetchScalarGridSpec(
            num_scalar_prefetch=0,
            grid=(B, n_lt),
            in_specs=[
                # weights & bias: constant index maps -> fetched once, VMEM-resident
                pl.BlockSpec((K, Cp, Cp), lambda b, lt: (0, 0, 0)),
                pl.BlockSpec((Cp, 1), lambda b, lt: (0, 0)),
                # both stride-2 phases of x, streamed per (batch, L-tile)
                pl.BlockSpec((pl.Squeezed(), 2, Cp, tL), lambda b, lt: (b, 0, 0, lt)),
            ],
            out_specs=pl.BlockSpec((pl.Squeezed(), Cp, tL), lambda b, lt: (b, 0, lt)),
            scratch_shapes=[pltpu.VMEM((Cp, 1), cdt)],  # cross-tile carry column
        ),
        compiler_params=pltpu.CompilerParams(
            # lt carries the (Cp, 1) column between tiles -> "arbitrary";
            # the batch axis stays "parallel" for megacore sharding.
            dimension_semantics=("parallel", "arbitrary"),
            vmem_limit_bytes=int(vmem_limit),
        ),
    )(w_stack, b_col, xp)

    return out_p[:, :C, :L_out]


def _reference_conv1d(x, weight, bias):
    # lax reference (NCL conv, kernel 3, stride 2, pad 1)
    out = jax.lax.conv_general_dilated(
        x, weight,
        window_strides=(2,), padding=((1, 1),),
        dimension_numbers=("NCH", "OIH", "NCH"),
    )
    return out + bias.reshape(1, -1, 1)


if __name__ == "__main__":
    key = jax.random.PRNGKey(0)
    k_x, k_w, k_b, k_x2 = jax.random.split(key, 4)

    B, dim, L = 2, 8, 16
    K = 3

    # Deterministic parameter init (mirrors PyTorch Conv1d uniform(-bound, bound))
    fan_in = dim * K
    bound = 1.0 / (fan_in ** 0.5)
    weight = jax.random.uniform(k_w, (dim, dim, K), jnp.float32, -bound, bound)
    bias = jax.random.uniform(k_b, (dim,), jnp.float32, -bound, bound)

    # Case 1: small shape, single L-tile.
    x = jax.random.normal(k_x, (B, dim, L), jnp.float32)
    out = jax.block_until_ready(downsample1d(x, weight, bias))
    ref = _reference_conv1d(x, weight, bias)
    assert out.shape == (B, dim, (L + 2 - K) // 2 + 1)
    assert out.dtype == x.dtype
    assert jnp.allclose(out, ref, atol=1e-5, rtol=1e-5)

    # Case 2: odd length + forced small tile -> exercises the cross-tile carry
    # and the right-edge zero padding.
    L2 = 259
    x2 = jax.random.normal(k_x2, (B, dim, L2), jnp.float32)
    out2 = jax.block_until_ready(downsample1d(x2, weight, bias, tile_l=128))
    ref2 = _reference_conv1d(x2, weight, bias)
    assert out2.shape == (B, dim, (L2 + 2 - K) // 2 + 1)
    assert jnp.allclose(out2, ref2, atol=1e-5, rtol=1e-5)

    print("KERNEL_OK")
</pallas_src>

<mosaic_0001>
module attributes {stable_mosaic.version = 11 : i64} {
  func.func @_down1d_kernel(%arg0: i32, %arg1: i32, %arg2: memref<3x8x8xf32, #tpu.memory_space<vmem>>, %arg3: memref<8x1xf32, #tpu.memory_space<vmem>>, %arg4: memref<1x2x8x128xf32, #tpu.memory_space<vmem>>, %arg5: memref<1x8x128xf32, #tpu.memory_space<vmem>>, %arg6: memref<8x1xf32, #tpu.memory_space<vmem>>) attributes {dimension_semantics = [#tpu.dimension_semantics<parallel>, #tpu.dimension_semantics<arbitrary>], iteration_bounds = array<i64: 2, 1>, scalar_prefetch = 0 : i64, scratch_operands = 1 : i64, tpu.core_type = #tpu.core_type<tc>, window_params = [{pipeline_mode = #tpu.pipeline_mode<synchronous>, transform_indices = @transform_0, window_bounds = array<i64: 3, 8, 8>}, {pipeline_mode = #tpu.pipeline_mode<synchronous>, transform_indices = @transform_1, window_bounds = array<i64: 8, 1>}, {transform_indices = @transform_2, window_bounds = array<i64: 1, 2, 8, 128>}, {transform_indices = @transform_3, window_bounds = array<i64: 1, 8, 128>}]} {
    %c0_i32 = arith.constant 0 : i32
    %0 = arith.cmpi eq, %arg1, %c0_i32 : i32
    %1 = arith.extui %0 : i1 to i32
    %c0_i32_0 = arith.constant 0 : i32
    %2 = arith.cmpi ne, %1, %c0_i32_0 : i32
    scf.if %2 {
      %cst_26 = arith.constant 0.000000e+00 : f32
      %29 = vector.broadcast %cst_26 : f32 to vector<8x1xf32>
      %c0_27 = arith.constant 0 : index
      %c0_28 = arith.constant 0 : index
      %30 = vector.load %arg6[%c0_27, %c0_28] : memref<8x1xf32, #tpu.memory_space<vmem>>, vector<8x1xf32>
      tpu.vector_store %arg6[%c0_27, %c0_28], %29 {strides = array<i32>} : memref<8x1xf32, #tpu.memory_space<vmem>>, vector<8x1xf32>,
    } else {
    }
    %c0 = arith.constant 0 : index
    %c0_1 = arith.constant 0 : index
    %c0_2 = arith.constant 0 : index
    %c0_3 = arith.constant 0 : index
    %3 = vector.load %arg4[%c0, %c0_1, %c0_2, %c0_3] : memref<1x2x8x128xf32, #tpu.memory_space<vmem>>, vector<1x1x8x128xf32>
    %4 = vector.shape_cast %3 : vector<1x1x8x128xf32> to vector<8x128xf32>
    %c0_4 = arith.constant 0 : index
    %c1 = arith.constant 1 : index
    %c0_5 = arith.constant 0 : index
    %c0_6 = arith.constant 0 : index
    %5 = vector.load %arg4[%c0_4, %c1, %c0_5, %c0_6] : memref<1x2x8x128xf32, #tpu.memory_space<vmem>>, vector<1x1x8x128xf32>
    %6 = vector.shape_cast %5 : vector<1x1x8x128xf32> to vector<8x128xf32>
    %c0_7 = arith.constant 0 : index
    %c0_8 = arith.constant 0 : index
    %7 = vector.load %arg6[%c0_7, %c0_8] : memref<8x1xf32, #tpu.memory_space<vmem>>, vector<8x1xf32>
    %8 = vector.extract_strided_slice %6 {offsets = [0, 0], sizes = [8, 127], strides = [1, 1]} : vector<8x128xf32> to vector<8x127xf32>
    %9 = tpu.concatenate %7, %8 in 1 : vector<8x1xf32>, vector<8x127xf32> -> vector<8x128xf32>
    %c0_9 = arith.constant 0 : index
    %c0_10 = arith.constant 0 : index
    %c0_11 = arith.constant 0 : index
    %10 = vector.load %arg2[%c0_9, %c0_10, %c0_11] : memref<3x8x8xf32, #tpu.memory_space<vmem>>, vector<1x8x8xf32>
    %11 = vector.shape_cast %10 : vector<1x8x8xf32> to vector<8x8xf32>
    %cst = arith.constant dense<0.000000e+00> : vector<8x128xf32>
    %12 = tpu.matmul %11, %9, %cst {dimension_numbers = #tpu.dot_dimension_numbers<[1], [0], [0], [1], [0, 0, 1, 1], [], []>} : vector<8x8xf32>, vector<8x128xf32>, vector<8x128xf32> -> vector<8x128xf32>
    %c1_12 = arith.constant 1 : index
    %c0_13 = arith.constant 0 : index
    %c0_14 = arith.constant 0 : index
    %13 = vector.load %arg2[%c1_12, %c0_13, %c0_14] : memref<3x8x8xf32, #tpu.memory_space<vmem>>, vector<1x8x8xf32>
    %14 = vector.shape_cast %13 : vector<1x8x8xf32> to vector<8x8xf32>
    %cst_15 = arith.constant dense<0.000000e+00> : vector<8x128xf32>
    %15 = tpu.matmul %14, %4, %cst_15 {dimension_numbers = #tpu.dot_dimension_numbers<[1], [0], [0], [1], [0, 0, 1, 1], [], []>} : vector<8x8xf32>, vector<8x128xf32>, vector<8x128xf32> -> vector<8x128xf32>
    %16 = arith.addf %12, %15 : vector<8x128xf32>
    %c2 = arith.constant 2 : index
    %c0_16 = arith.constant 0 : index
    %c0_17 = arith.constant 0 : index
    %17 = vector.load %arg2[%c2, %c0_16, %c0_17] : memref<3x8x8xf32, #tpu.memory_space<vmem>>, vector<1x8x8xf32>
    %18 = vector.shape_cast %17 : vector<1x8x8xf32> to vector<8x8xf32>
    %cst_18 = arith.constant dense<0.000000e+00> : vector<8x128xf32>
    %19 = tpu.matmul %18, %6, %cst_18 {dimension_numbers = #tpu.dot_dimension_numbers<[1], [0], [0], [1], [0, 0, 1, 1], [], []>} : vector<8x8xf32>, vector<8x128xf32>, vector<8x128xf32> -> vector<8x128xf32>
    %20 = arith.addf %16, %19 : vector<8x128xf32>
    %c0_19 = arith.constant 0 : index
    %c0_20 = arith.constant 0 : index
    %21 = vector.load %arg3[%c0_19, %c0_20] : memref<8x1xf32, #tpu.memory_space<vmem>>, vector<8x1xf32>
    %22 = vector.broadcast %21 : vector<8x1xf32> to vector<8x128xf32>
    %23 = arith.addf %20, %22 : vector<8x128xf32>
    %c0_21 = arith.constant 0 : index
    %c0_22 = arith.constant 0 : index
    %c0_23 = arith.constant 0 : index
    %24 = vector.load %arg5[%c0_21, %c0_22, %c0_23] : memref<1x8x128xf32, #tpu.memory_space<vmem>>, vector<1x8x128xf32>
    %25 = vector.shape_cast %24 : vector<1x8x128xf32> to vector<8x128xf32>
    %26 = vector.shape_cast %23 : vector<8x128xf32> to vector<1x8x128xf32>
    tpu.vector_store %arg5[%c0_21, %c0_22, %c0_23], %26 {strides = array<i32>} : memref<1x8x128xf32, #tpu.memory_space<vmem>>, vector<1x8x128xf32>,
    %27 = vector.extract_strided_slice %6 {offsets = [0, 127], sizes = [8, 1], strides = [1, 1]} : vector<8x128xf32> to vector<8x1xf32>
    %c0_24 = arith.constant 0 : index
    %c0_25 = arith.constant 0 : index
    %28 = vector.load %arg6[%c0_24, %c0_25] : memref<8x1xf32, #tpu.memory_space<vmem>>, vector<8x1xf32>
    tpu.vector_store %arg6[%c0_24, %c0_25], %27 {strides = array<i32>} : memref<8x1xf32, #tpu.memory_space<vmem>>, vector<8x1xf32>,
    return
  }
  func.func @transform_0(%arg0: i32, %arg1: i32) -> (i32, i32, i32) {
    %c0_i32 = arith.constant 0 : i32
    %c0_i32_0 = arith.constant 0 : i32
    %c0_i32_1 = arith.constant 0 : i32
    %c0_i32_2 = arith.constant 0 : i32
    return %c0_i32, %c0_i32_0, %c0_i32_1 : i32, i32, i32
  }
  func.func @transform_1(%arg0: i32, %arg1: i32) -> (i32, i32) {
    %c0_i32 = arith.constant 0 : i32
    %c0_i32_0 = arith.constant 0 : i32
    %c0_i32_1 = arith.constant 0 : i32
    return %c0_i32, %c0_i32_0 : i32, i32
  }
  func.func @transform_2(%arg0: i32, %arg1: i32) -> (i32, i32, i32, i32) {
    %c0_i32 = arith.constant 0 : i32
    %c0_i32_0 = arith.constant 0 : i32
    %c0_i32_1 = arith.constant 0 : i32
    return %arg0, %c0_i32, %c0_i32_0, %arg1 : i32, i32, i32, i32
  }
  func.func @transform_3(%arg0: i32, %arg1: i32) -> (i32, i32, i32) {
    %c0_i32 = arith.constant 0 : i32
    %c0_i32_0 = arith.constant 0 : i32
    return %arg0, %c0_i32, %arg1 : i32, i32, i32
  }
}

</mosaic_0001>

<bundles_post_ra>
// kernel: tpu_custom_call.1
= control target key start
LH: loop header
LB: loop body
LE: loop exit
PB: predicated region body
PF: predicated region fallthrough
CT: control target
= control target key end

     0   :  { %s872_s0 = inlined_call_operand.hbm [shape: f32[3,8,8], index: 0, kind: input, shape index: {}]   ;;  %s873_s1 = inlined_call_operand.vmem [shape: f32[8,1], index: 1, kind: input, shape index: {}]   ;;  %s874_s2 = inlined_call_operand.hbm [shape: f32[2,2,8,128], index: 2, kind: input, shape index: {}]   ;;  %s875_s3 = inlined_call_operand.hbm [shape: f32[2,8,128], index: 3, kind: output, shape index: {}]  }
   0x1   :  { %877 = sst [smem:[#allocation12_spill]] %s872_s0 }
   0x2   :  { %8 = vsyncpa [#allocation4], 0 }
   0x3   :  { %9 = vsyncpa [#allocation7], 0 }
   0x4   :  { %11 = vsyncpa [#allocation7 + $0x1], 0 }
   0x5   :  { %12 = vsyncpa [#allocation5], 0 }
   0x6   :  { %14 = vsyncpa [#allocation5 + $0x1], 0  ;;  %s710_s12 = smov 0   ;;  %s712_s13 = smov 0  }
   0x7   :  { %s714_s14 = smov 0   ;;  %s716_s15 = smov 0  }
   0x8   :  { %s718_s16 = smov 0   ;;  %s720_s17 = smov 0  }
   0x9 LB: > { %s436_s18 = sadd.s32 4294967295, %s682_s17   ;;  %s437_s19 = sadd.s32 4294967294, %s682_s17   ;;  %s682_s17 = sphi %s720_s17, %s20_s17   ;;  %s678_s16 = sphi %s718_s16, %s891_s16   ;;  %s674_s15 = sphi %s716_s15, %s890_s15   ;;  %s670_s14 = sphi %s714_s14, %s889_s14   ;;  %s666_s13 = sphi %s712_s13, %s888_s13   ;;  %s662_s12 = sphi %s710_s12, %s887_s12  }
   0xa   : > { %p96_p0 = scmp.ne.s32.totalorder %s666_s13, %s662_s12  ;;  %p744_p1 = scmp.eq.s32.totalorder %s436_s18, 0 }
   0xb   : > { %p748_p2 = scmp.eq.s32.totalorder %s436_s18, 1  ;;  %p128_p3 = scmp.eq.s32.totalorder %s437_s19, 1 }
   0xc   : > { %p754_p4 = por %p744_p1, %p96_p0  ;;  %p438_p5 = scmp.ge.s32.totalorder %s682_s17, 1 }
   0xd   : > { %p759_p6 = por %p128_p3, %p96_p0  ;;  %p135_p7 = scmp.lt.s32.totalorder %s682_s17, 3 }
   0xe   : > { %s882_s0 = sld [smem:[#allocation12_spill]]  ;;  %s684_s28 = smov [#allocation3]  }
   0xf   : > { %p767_p8 = pnand %p438_p5, %p135_p7  ;;  %s148_s29 = sshll.u32 %s684_s28, 4  ;;  %s149_s29 = int_to_ptr.vmem [resolvable:$true] %s148_s29 }
  0x10   : > { %p440_p11 = scmp.ge.s32.totalorder %s682_s17, 2  ;;  %s876_s30 = smov 128  }
  0x11   : > { %p465_p9 = pneg %p767_p8  ;;  %s686_s4 = smov 8  }
  0x12   : > { %s32_s5 = sadd.s32 1, %s678_s16  ;;  %s83_s6 = sadd.s32 1, %s670_s14 }
  0x13   : > { %p466_p10 = pnand %p465_p9, %p744_p1  ;;  %p34_p12 = scmp.ge.s32.totalorder %s32_s5, 2 }
  0x14   : > { %s146_s26 = sshll.u32 %s882_s0, 4  ;;  %p90_p13 = scmp.ne.s32.totalorder %s670_s14, %s666_s13  ;;  %s147_s26 = int_to_ptr.hbm [resolvable:$true] %s146_s26 }
  0x15   : > { %468 = dma.hbm_to_vmem [thread:$0]  (!%p466_p10), %s147_s26, 384, %s149_s29, [#allocation4], %s876_s30, %s876_s30, %s686_s4  }
  0x16   : > { %p91_p0 = scmp.eq.s32.totalorder %s682_s17, 0  ;;  %s893_s5 = smov (%p34_p12, %s32_s5), 0 }
  0x17   : > { %p792_p5 = por %p748_p2, %p90_p13  ;;  %s78_s9 = ssub.s32 %s678_s16, %s893_s5 }
  0x18   : > { %p786_p3 = por %p91_p0, %p90_p13  ;;  %p478_p7 = scmp.lt.s32.totalorder %s682_s17, 2 }
  0x19   : > { %p81_p9 = scmp.eq.s32.totalorder %s78_s9, 0  ;;  %s165_s10 = sand.u32 1, %s670_s14  }
  0x1a   : > { %s441_s11 = sshll.u32 %s165_s10, 4  ;;  %s456_s19 = sshll.u32 %s678_s16, 4 }
  0x1b   : > { %s801_s18 = scalar_select %p81_p9, %s670_s14, %s83_s6  }
  0x1c   : > { %s175_s26 = scalar_lea.hbm %s874_s2, %s456_s19  ;;  %s169_s28 = scalar_lea.vmem [#allocation6], %s441_s11 }
  0x1d   : > { %s178_s29 = sshll.u32 %s169_s28, 4  ;;  %s176_s21 = sshll.u32 %s175_s26, 4  ;;  %s179_s29 = int_to_ptr.vmem [resolvable:$true] %s178_s29  ;;  %s177_s21 = int_to_ptr.hbm [resolvable:$true] %s176_s21 }
  0x1e   : > { %p470_p2 = pnand %p478_p7, %p786_p3  ;;  %s166_s30 = scalar_lea.sflag [#allocation7], %s165_s10 }
  0x1f   : > { %s886_s0 = smov 128   ;;  %190 = sbr.rel (%p767_p8) target bundleno = 294 (0x126), region = 32 }
  0x20   : > { %472 = dma.hbm_to_vmem [thread:$0]  (!%p470_p2), %s177_s21, 256, %s179_s29, %s166_s30, %s886_s0, %s886_s0, %s686_s4  }
  0x24   : > { %649 = dma.done.wait (%p744_p1), [#allocation4], 384  }
  0x25   : > { %651 = vsyncadd (%p744_p1), [#allocation4], 4294966912  ;;  %s819_s6 = sand.u32 1, %s666_s13  }
  0x26   : > { %s446_s7 = sshll.u32 %s819_s6, 4  ;;  %s198_s9 = scalar_lea.sflag [#allocation7], %s819_s6 }
  0x27   : > { %s201_s10 = scalar_lea.vmem [#allocation6], %s446_s7 }
  0x28   : > { %653 = dma.done.wait (%p754_p4), %s198_s9, 256  }
  0x29   : > { %655 = vsyncadd (%p754_p4), %s198_s9, 4294967040  ;;  %vm244_vm0 = vcmask 64512   ;;  %v448_v0 = vld [vmem:[%s201_s10 + $0x8] sm:$0xff]  ;;  %s687_s0 = smov 1   ;;  %vm229_vm1 = vcmask 7168   ;;  %v688_v2 = vmov 0.0  }
  0x2a   : > { %v292_v1 = vld [vmem:[#allocation3 + $0x10] sm:$0xff]  ;;  %236 = vrot.lane.b32.xlu0 %v448_v0, %s687_s0  ;;  %311 = vmatpush.msra.mxu2 %v448_v0  ;;  %230 = vst.msk [vmem:[#allocation2] sm:$0xff] %vm229_vm1, %v688_v2  ;;  %v231_v3 = vld [vmem:[%s201_s10] sm:$0xff]  ;;  %v689_v6 = vmov 0   ;;  %v241_v9 = vld [vmem:[#allocation3] sm:$0xff]  ;;  %s447_s27 = sshll.u32 %s819_s6, 3 }
  0x2b   : > { %451 = vmatmul.msk.f32.vlgmr.msra.gmra.mxu2 %vm244_vm0, %v292_v1  ;;  %263 = vmatpush.msra.mxu0 %v231_v3  ;;  %v243_v4 = vld [vmem:[#allocation3 + $0x8] sm:$0xff]  ;;  %v317_v5 = vld [vmem:[%s873_s1] sm:$0xff]  ;;  %s453_s30 = sshll.u32 %s674_s15, 3  ;;  %s224_s24 = scalar_lea.vmem [#allocation8], %s447_s27 }
  0x2c   : > { %449 = vmatmul.msk.f32.vlgmr.msra.gmra.mxu0 %vm244_vm0, %v243_v4  ;;  %535 = vset.pattern.permute.xlu0 %v689_v6  ;;  %s338_s19 = scalar_lea.hbm %s875_s3, %s453_s30  ;;  %s340_s25 = sshll.u32 %s224_s24, 4  ;;  %s341_s25 = int_to_ptr.vmem [resolvable:$true] %s340_s25 }
  0x2d   : > { %s342_s26 = sshll.u32 %s338_s19, 4  ;;  %s327_s28 = scalar_lea.sflag [#allocation5], %s819_s6  ;;  %s343_s26 = int_to_ptr.hbm [resolvable:$true] %s342_s26 }
  0x2e   : > { %s610_s15 = sshra.s32 %s343_s26, 4  ;;  %s616_s9 = scalar_lea.hbm %s875_s3, 16  ;;  %s611_s15 = int_to_ptr.hbm [resolvable:$true] %s610_s15 }
  0x2f   : > { %s612_s29 = scalar_lea.hbm %s611_s15, 8  ;;  %p617_p10 = scmp.lt.s32.totalorder %s611_s15, %s875_s3 }
  0x30   : > { %p613_p1 = scmp.ne.s32.totalorder %s611_s15, %s612_s29  ;;  %p618_p12 = scmp.lt.s32.totalorder %s616_s9, %s612_s29 }
  0x31   : > { %v234_v7 = vld [vmem:[#allocation2] sm:$0xff] }
  0x32   : > { %320 = vperm.xlu0 %535, %v317_v5   ;;  %p614_p4 = pnand %p613_p1, %p792_p5  ;;  %p619_p13 = por %p618_p12, %p617_p10 }
  0x34   : > { %p615_p8 = pneg %p614_p4 }
  0x36   : > { %p620_p0 = pnand %p619_p13, %p615_p8 }
  0x9c   : > { %v237_v8 = vpop.permute.xlu0 %236 }
  0x9d   : > { %v240_v10 = vsel %vm229_vm1, %v234_v7, %v237_v8  ;;  %325 = vst.msk [vmem:[#allocation2] sm:$0xff] %vm229_vm1, %v237_v8 }
  0x9e   : > { %286 = vmatpush.msra.mxu1 %v240_v10 }
  0x9f   : > { %450 = vmatmul.msk.f32.vlgmr.msra.gmra.mxu1 %vm244_vm0, %v241_v9 }
  0xa4   : > { %v321_v15 = vpop.permute.xlu0 %320 }
  0xa9   : > { %v265_v11 = vpop.f32.mrf.mxu0 }
  0xae   : > { %v313_v13 = vpop.f32.mrf.mxu2 }
 0x11c   : > { %v288_v12 = vpop.f32.mrf.mxu1 }
 0x11d   : > { %v289_v14 = vadd.f32 %v288_v12, %v265_v11 }
 0x11f   : > { %v316_v16 = vadd.f32 %v313_v13, %v289_v14 }
 0x121   : > { %v323_v17 = vadd.f32 %v321_v15, %v316_v16 }
 0x123   : > { %324 = vst [vmem:[%s224_s24] sm:$0xff] %v323_v17 }
 0x124   : > { %623 = shalt.err (!%p620_p0)
}
 0x125   : > { %463 = dma.vmem_to_hbm [thread:$0]  (%p792_p5), %s341_s25, 128, %s343_s26, %s327_s28  }
 0x126 PF: > { %s354_s6 = sand.u32 1, %s662_s12   ;;  %p474_p3 = pnand %p440_p11, %p759_p6 }
 0x127   : > { %s355_s20 = scalar_lea.sflag [#allocation5], %s354_s6 }
 0x128   : > { %p475_p7 = pneg %p474_p3 }
 0x12a   : > { %657 = dma.done.wait (%p475_p7), %s355_s20, 128  }
 0x12b   : > { %659 = vsyncadd (%p475_p7), %s355_s20, 4294967168  ;;  %s20_s17 = sadd.s32 1, %s682_s17   ;;  %s887_s12 = smov %s666_s13 }
 0x12c   : > { %p17_p9 = scmp.ge.s32.totalorder %s20_s17, 4   ;;  %s888_s13 = smov %s670_s14 }
 0x12d   : > { %s889_s14 = smov %s801_s18  ;;  %s890_s15 = smov %s678_s16 }
 0x12e   : > { %s891_s16 = smov %s893_s5  ;;  %19 = sbr.rel (!%p17_p9) target bundleno = 9 (0x9), region = 89 }
 0x133   :  { %361 = vsyncpa [#allocation4], 1 }
 0x134   :  { %363 = vsyncpa [#allocation4 + $0x1], 1 }
 0x135   :  { %364 = vsyncpa [#allocation7], 1 }
 0x136   :  { %366 = vsyncpa [#allocation7 + $0x1], 1 }
 0x137   :  { %367 = vsyncpa [#allocation5], 1 }
 0x138   :  { %369 = vsyncpa [#allocation5 + $0x1], 1 }

</bundles_post_ra>
